<compile_context>
chip_gen: v6e
topology: v6e:2x2x1
jax: 0.10.0
libtpu: 0.0.40
codegen_flags: <defaults>
</compile_context>

<pallas_src>
import functools
import math

import jax
import jax.numpy as jnp
from jax import lax
from jax.experimental import pallas as pl
from jax.experimental.pallas import tpu as pltpu


# ----------------------------------------------------------------------------
# Helpers
# ----------------------------------------------------------------------------
def _round_up(x, m):
    return ((x + m - 1) // m) * m


def _vmem_capacity_bytes():
    """Physical VMEM of the local chip; conservative (v7x) fallback."""
    try:
        return int(pltpu.get_tpu_info().vmem_capacity_bytes)
    except Exception:
        return 64 * 1024 * 1024


def _pick_token_tile(n_tokens, max_tokens_by_vmem):
    """Largest useful tile: capped by VMEM, by the work size, and kept small
    enough that the grid has >= 2 steps (pipelining / v7x megacore)."""
    tile = min(2048, max(8, int(max_tokens_by_vmem)), _round_up(n_tokens, 8))
    if n_tokens >= 16:
        tile = min(tile, _round_up((n_tokens + 1) // 2, 8))
    return max(8, (tile // 8) * 8)


# ----------------------------------------------------------------------------
# Path 1: VMEM-resident table, dynamic-slice gather (small / medium tables)
# ----------------------------------------------------------------------------
def _embedding_vmem_kernel(ids_ref, table_ref, out_ref, *, scale, token_tile):
    """One grid step = `token_tile` tokens.

    ids_ref  : SMEM (n_pad,) int32        -- all token ids (scalar prefetch)
    table_ref: VMEM (vocab, d_model)      -- resident (constant block index)
    out_ref  : VMEM (token_tile, d_model) -- output tile (lane-dense store)
    """
    base = pl.program_id(0) * token_tile

    def gather_row(r, carry):
        tok = ids_ref[base + r]
        row = table_ref[pl.ds(tok, 1), :].astype(jnp.float32) * scale
        out_ref[pl.ds(r, 1), :] = row.astype(out_ref.dtype)
        return carry

    lax.fori_loop(0, token_tile, gather_row, 0, unroll=8)


# ----------------------------------------------------------------------------
# Path 2: HBM-resident table, double-buffered DMA row gather (large tables)
# ----------------------------------------------------------------------------
def _embedding_hbm_gather_kernel(ids_ref, emb_hbm, out_ref, gbuf, sems, *,
                                 scale, token_tile):
    """One grid step = `token_tile` tokens, gathered by per-row DMA.

    ids_ref: SMEM (n_pad,) int32           -- all token ids (scalar prefetch)
    emb_hbm: HBM  (vocab, d_model)         -- table left in HBM (pl.ANY)
    out_ref: VMEM (token_tile, d_model)    -- output tile
    gbuf   : VMEM (2*token_tile, d_model)  -- two landing slots, flattened
    sems   : DMA semaphores (2,)           -- one per slot
    """
    i = pl.program_id(0)
    nsteps = pl.num_programs(0)
    slot = lax.rem(i, 2)

    def issue_tile(tile_idx, slot_idx):
        base_tok = tile_idx * token_tile
        base_row = slot_idx * token_tile

        def start_row(r, carry):
            tok = ids_ref[base_tok + r]
            pltpu.make_async_copy(
                emb_hbm.at[pl.ds(tok, 1), :],
                gbuf.at[pl.ds(base_row + r, 1), :],
                sems.at[slot_idx],
            ).start()
            return carry

        lax.fori_loop(0, token_tile, start_row, 0, unroll=8)

    # Prime: the first grid step gathers its own tile into slot 0.
    @pl.when(i == 0)
    def _prime():
        issue_tile(0, 0)

    # Cross-step prefetch: tile i+1's row DMAs are already in flight while
    # tile i is drained / scaled / stored (and while Pallas writes back i-1).
    @pl.when(i + 1 < nsteps)
    def _prefetch_next():
        issue_tile(i + 1, 1 - slot)

    # Drain the current slot.  All of its rows share one DMA semaphore; each
    # wait descriptor mirrors the matching start's destination, so the byte
    # accounting matches by construction.
    cur_base = slot * token_tile

    def wait_row(r, carry):
        row_ref = gbuf.at[pl.ds(cur_base + r, 1), :]
        pltpu.make_async_copy(row_ref, row_ref, sems.at[slot]).wait()
        return carry

    lax.fori_loop(0, token_tile, wait_row, 0, unroll=8)

    start = pl.multiple_of(cur_base, 8)
    tile = gbuf[pl.ds(start, token_tile), :].astype(jnp.float32) * scale
    out_ref[...] = tile.astype(out_ref.dtype)


# ----------------------------------------------------------------------------
# Wrapper
# ----------------------------------------------------------------------------
def input_embeddings(x, emb_table, *, token_tile=None, force_hbm_gather=False):
    """x: int (batch, seq); emb_table: (vocab, d_model).
    Returns emb_table[x] * sqrt(d_model), shape (batch, seq, d_model)."""
    batch, seq = x.shape
    vocab, d_model = emb_table.shape
    n = batch * seq
    itemsize = jnp.dtype(emb_table.dtype).itemsize
    per_token_bytes = d_model * itemsize
    table_bytes = vocab * per_token_bytes
    scale = float(math.sqrt(d_model))

    cap = _vmem_capacity_bytes()
    budget = int(cap * 0.70)        # budget for our explicit buffers
    vmem_limit = int(cap * 0.85)    # scoped VMEM limit handed to Mosaic

    use_vmem_table = (not force_hbm_gather) and (
        table_bytes + 2 * 128 * per_token_bytes <= budget)

    if token_tile is None:
        if use_vmem_table:
            # table + 2x (double-buffered) output tiles must fit.
            token_tile = _pick_token_tile(
                n, (budget - table_bytes) // (2 * per_token_bytes))
        else:
            # 2x output tiles + 2x gather landing tiles must fit.
            token_tile = _pick_token_tile(n, budget // (4 * per_token_bytes))
    token_tile = max(8, (int(token_tile) // 8) * 8)

    n_pad = _round_up(n, token_tile)
    grid = n_pad // token_tile

    # OOB policy: clamp (nn.Embedding would raise).  Padding rows use id 0.
    ids = jnp.clip(x.reshape(n).astype(jnp.int32), 0, vocab - 1)
    if n_pad != n:
        ids = jnp.concatenate([ids, jnp.zeros((n_pad - n,), jnp.int32)])

    if use_vmem_table:
        kernel = functools.partial(_embedding_vmem_kernel,
                                   scale=scale, token_tile=token_tile)
        grid_spec = pltpu.PrefetchScalarGridSpec(
            num_scalar_prefetch=1,
            grid=(grid,),
            in_specs=[pl.BlockSpec((vocab, d_model), lambda i, ids_sm: (0, 0))],
            out_specs=pl.BlockSpec((token_tile, d_model),
                                   lambda i, ids_sm: (i, 0)),
        )
        semantics = ("parallel",)
    else:
        kernel = functools.partial(_embedding_hbm_gather_kernel,
                                   scale=scale, token_tile=token_tile)
        grid_spec = pltpu.PrefetchScalarGridSpec(
            num_scalar_prefetch=1,
            grid=(grid,),
            in_specs=[pl.BlockSpec(memory_space=pl.ANY)],
            out_specs=pl.BlockSpec((token_tile, d_model),
                                   lambda i, ids_sm: (i, 0)),
            scratch_shapes=[
                pltpu.VMEM((2 * token_tile, d_model), emb_table.dtype),
                pltpu.SemaphoreType.DMA((2,)),
            ],
        )
        # Cross-step DMA prefetch carries state between consecutive grid
        # steps, so this axis must run sequentially on one core.
        semantics = ("arbitrary",)

    out_flat = pl.pallas_call(
        kernel,
        out_shape=jax.ShapeDtypeStruct((n_pad, d_model), emb_table.dtype),
        grid_spec=grid_spec,
        compiler_params=pltpu.CompilerParams(
            dimension_semantics=semantics,
            vmem_limit_bytes=vmem_limit,
        ),
    )(ids, emb_table)

    return out_flat[:n].reshape(batch, seq, d_model)


# ----------------------------------------------------------------------------
# Demo / self-test
# ----------------------------------------------------------------------------
if __name__ == "__main__":
    # Small shapes; d_model is a multiple of 128 so output stores are
    # lane-dense (real transformer d_model usually is).
    d_model = 128
    vocab_size = 64
    batch, seq = 2, 8

    key = jax.random.PRNGKey(0)
    k_emb, k_ids = jax.random.split(key)

    # Deterministic "nn.Embedding" weight init (N(0,1), like PyTorch default).
    emb_table = jax.random.normal(k_emb, (vocab_size, d_model),
                                  dtype=jnp.float32)
    x = jax.random.randint(k_ids, (batch, seq), 0, vocab_size,
                           dtype=jnp.int32)

    ref = emb_table[x] * math.sqrt(d_model)

    # Fast path: VMEM-resident table (fits easily on every generation).
    out_vmem = jax.block_until_ready(input_embeddings(x, emb_table))
    assert out_vmem.shape == (batch, seq, d_model)
    assert jnp.allclose(out_vmem, ref, atol=1e-5, rtol=1e-5), \
        "VMEM-table path mismatch vs reference"

    # Large-table path: HBM-resident table with double-buffered DMA gather.
    out_hbm = jax.block_until_ready(
        input_embeddings(x, emb_table, force_hbm_gather=True))
    assert jnp.allclose(out_hbm, ref, atol=1e-5, rtol=1e-5), \
        "HBM-gather path mismatch vs reference"

    print("KERNEL_OK")
</pallas_src>

<mosaic_0001>
module attributes {stable_mosaic.version = 11 : i64} {
  func.func @_embedding_vmem_kernel(%arg0: i32, %arg1: memref<16xi32, #tpu.memory_space<smem>>, %arg2: memref<64x128xf32, #tpu.memory_space<vmem>>, %arg3: memref<8x128xf32, #tpu.memory_space<vmem>>) attributes {dimension_semantics = [#tpu.dimension_semantics<parallel>], iteration_bounds = array<i64: 2>, scalar_prefetch = 1 : i64, scratch_operands = 0 : i64, tpu.core_type = #tpu.core_type<tc>, window_params = [{pipeline_mode = #tpu.pipeline_mode<synchronous>, transform_indices = @transform_0, window_bounds = array<i64: 64, 128>}, {transform_indices = @transform_1, window_bounds = array<i64: 8, 128>}]} {
    %c8_i32 = arith.constant 8 : i32
    %0 = arith.muli %arg0, %c8_i32 : i32
    %c0_i32 = arith.constant 0 : i32
    %1 = arith.addi %0, %c0_i32 : i32
    %2 = arith.index_cast %1 : i32 to index
    %3 = memref.load %arg1[%2] : memref<16xi32, #tpu.memory_space<smem>>
    %4 = arith.index_cast %3 : i32 to index
    %c0 = arith.constant 0 : index
    %5 = vector.load %arg2[%4, %c0] : memref<64x128xf32, #tpu.memory_space<vmem>>, vector<1x128xf32>
    %cst = arith.constant 11.3137083 : f32
    %6 = vector.broadcast %cst : f32 to vector<1x128xf32>
    %7 = arith.mulf %5, %6 : vector<1x128xf32>
    %8 = arith.index_cast %c0_i32 : i32 to index
    %c0_0 = arith.constant 0 : index
    %9 = vector.load %arg3[%8, %c0_0] : memref<8x128xf32, #tpu.memory_space<vmem>>, vector<1x128xf32>
    tpu.vector_store %arg3[%8, %c0_0], %7 {strides = array<i32>} : memref<8x128xf32, #tpu.memory_space<vmem>>, vector<1x128xf32>,
    %c1_i32 = arith.constant 1 : i32
    %10 = arith.addi %0, %c1_i32 : i32
    %11 = arith.index_cast %10 : i32 to index
    %12 = memref.load %arg1[%11] : memref<16xi32, #tpu.memory_space<smem>>
    %13 = arith.index_cast %12 : i32 to index
    %c0_1 = arith.constant 0 : index
    %14 = vector.load %arg2[%13, %c0_1] : memref<64x128xf32, #tpu.memory_space<vmem>>, vector<1x128xf32>
    %cst_2 = arith.constant 11.3137083 : f32
    %15 = vector.broadcast %cst_2 : f32 to vector<1x128xf32>
    %16 = arith.mulf %14, %15 : vector<1x128xf32>
    %17 = arith.index_cast %c1_i32 : i32 to index
    %c0_3 = arith.constant 0 : index
    %18 = vector.load %arg3[%17, %c0_3] : memref<8x128xf32, #tpu.memory_space<vmem>>, vector<1x128xf32>
    tpu.vector_store %arg3[%17, %c0_3], %16 {strides = array<i32>} : memref<8x128xf32, #tpu.memory_space<vmem>>, vector<1x128xf32>,
    %c2_i32 = arith.constant 2 : i32
    %19 = arith.addi %0, %c2_i32 : i32
    %20 = arith.index_cast %19 : i32 to index
    %21 = memref.load %arg1[%20] : memref<16xi32, #tpu.memory_space<smem>>
    %22 = arith.index_cast %21 : i32 to index
    %c0_4 = arith.constant 0 : index
    %23 = vector.load %arg2[%22, %c0_4] : memref<64x128xf32, #tpu.memory_space<vmem>>, vector<1x128xf32>
    %cst_5 = arith.constant 11.3137083 : f32
    %24 = vector.broadcast %cst_5 : f32 to vector<1x128xf32>
    %25 = arith.mulf %23, %24 : vector<1x128xf32>
    %26 = arith.index_cast %c2_i32 : i32 to index
    %c0_6 = arith.constant 0 : index
    %27 = vector.load %arg3[%26, %c0_6] : memref<8x128xf32, #tpu.memory_space<vmem>>, vector<1x128xf32>
    tpu.vector_store %arg3[%26, %c0_6], %25 {strides = array<i32>} : memref<8x128xf32, #tpu.memory_space<vmem>>, vector<1x128xf32>,
    %c3_i32 = arith.constant 3 : i32
    %28 = arith.addi %0, %c3_i32 : i32
    %29 = arith.index_cast %28 : i32 to index
    %30 = memref.load %arg1[%29] : memref<16xi32, #tpu.memory_space<smem>>
    %31 = arith.index_cast %30 : i32 to index
    %c0_7 = arith.constant 0 : index
    %32 = vector.load %arg2[%31, %c0_7] : memref<64x128xf32, #tpu.memory_space<vmem>>, vector<1x128xf32>
    %cst_8 = arith.constant 11.3137083 : f32
    %33 = vector.broadcast %cst_8 : f32 to vector<1x128xf32>
    %34 = arith.mulf %32, %33 : vector<1x128xf32>
    %35 = arith.index_cast %c3_i32 : i32 to index
    %c0_9 = arith.constant 0 : index
    %36 = vector.load %arg3[%35, %c0_9] : memref<8x128xf32, #tpu.memory_space<vmem>>, vector<1x128xf32>
    tpu.vector_store %arg3[%35, %c0_9], %34 {strides = array<i32>} : memref<8x128xf32, #tpu.memory_space<vmem>>, vector<1x128xf32>,
    %c4_i32 = arith.constant 4 : i32
    %37 = arith.addi %0, %c4_i32 : i32
    %38 = arith.index_cast %37 : i32 to index
    %39 = memref.load %arg1[%38] : memref<16xi32, #tpu.memory_space<smem>>
    %40 = arith.index_cast %39 : i32 to index
    %c0_10 = arith.constant 0 : index
    %41 = vector.load %arg2[%40, %c0_10] : memref<64x128xf32, #tpu.memory_space<vmem>>, vector<1x128xf32>
    %cst_11 = arith.constant 11.3137083 : f32
    %42 = vector.broadcast %cst_11 : f32 to vector<1x128xf32>
    %43 = arith.mulf %41, %42 : vector<1x128xf32>
    %44 = arith.index_cast %c4_i32 : i32 to index
    %c0_12 = arith.constant 0 : index
    %45 = vector.load %arg3[%44, %c0_12] : memref<8x128xf32, #tpu.memory_space<vmem>>, vector<1x128xf32>
    tpu.vector_store %arg3[%44, %c0_12], %43 {strides = array<i32>} : memref<8x128xf32, #tpu.memory_space<vmem>>, vector<1x128xf32>,
    %c5_i32 = arith.constant 5 : i32
    %46 = arith.addi %0, %c5_i32 : i32
    %47 = arith.index_cast %46 : i32 to index
    %48 = memref.load %arg1[%47] : memref<16xi32, #tpu.memory_space<smem>>
    %49 = arith.index_cast %48 : i32 to index
    %c0_13 = arith.constant 0 : index
    %50 = vector.load %arg2[%49, %c0_13] : memref<64x128xf32, #tpu.memory_space<vmem>>, vector<1x128xf32>
    %cst_14 = arith.constant 11.3137083 : f32
    %51 = vector.broadcast %cst_14 : f32 to vector<1x128xf32>
    %52 = arith.mulf %50, %51 : vector<1x128xf32>
    %53 = arith.index_cast %c5_i32 : i32 to index
    %c0_15 = arith.constant 0 : index
    %54 = vector.load %arg3[%53, %c0_15] : memref<8x128xf32, #tpu.memory_space<vmem>>, vector<1x128xf32>
    tpu.vector_store %arg3[%53, %c0_15], %52 {strides = array<i32>} : memref<8x128xf32, #tpu.memory_space<vmem>>, vector<1x128xf32>,
    %c6_i32 = arith.constant 6 : i32
    %55 = arith.addi %0, %c6_i32 : i32
    %56 = arith.index_cast %55 : i32 to index
    %57 = memref.load %arg1[%56] : memref<16xi32, #tpu.memory_space<smem>>
    %58 = arith.index_cast %57 : i32 to index
    %c0_16 = arith.constant 0 : index
    %59 = vector.load %arg2[%58, %c0_16] : memref<64x128xf32, #tpu.memory_space<vmem>>, vector<1x128xf32>
    %cst_17 = arith.constant 11.3137083 : f32
    %60 = vector.broadcast %cst_17 : f32 to vector<1x128xf32>
    %61 = arith.mulf %59, %60 : vector<1x128xf32>
    %62 = arith.index_cast %c6_i32 : i32 to index
    %c0_18 = arith.constant 0 : index
    %63 = vector.load %arg3[%62, %c0_18] : memref<8x128xf32, #tpu.memory_space<vmem>>, vector<1x128xf32>
    tpu.vector_store %arg3[%62, %c0_18], %61 {strides = array<i32>} : memref<8x128xf32, #tpu.memory_space<vmem>>, vector<1x128xf32>,
    %c7_i32 = arith.constant 7 : i32
    %64 = arith.addi %0, %c7_i32 : i32
    %65 = arith.index_cast %64 : i32 to index
    %66 = memref.load %arg1[%65] : memref<16xi32, #tpu.memory_space<smem>>
    %67 = arith.index_cast %66 : i32 to index
    %c0_19 = arith.constant 0 : index
    %68 = vector.load %arg2[%67, %c0_19] : memref<64x128xf32, #tpu.memory_space<vmem>>, vector<1x128xf32>
    %cst_20 = arith.constant 11.3137083 : f32
    %69 = vector.broadcast %cst_20 : f32 to vector<1x128xf32>
    %70 = arith.mulf %68, %69 : vector<1x128xf32>
    %71 = arith.index_cast %c7_i32 : i32 to index
    %c0_21 = arith.constant 0 : index
    %72 = vector.load %arg3[%71, %c0_21] : memref<8x128xf32, #tpu.memory_space<vmem>>, vector<1x128xf32>
    tpu.vector_store %arg3[%71, %c0_21], %70 {strides = array<i32>} : memref<8x128xf32, #tpu.memory_space<vmem>>, vector<1x128xf32>,
    %c8_i32_22 = arith.constant 8 : i32
    return
  }
  func.func @transform_0(%arg0: i32, %arg1: memref<16xi32, #tpu.memory_space<smem>>) -> (i32, i32) {
    %c0_i32 = arith.constant 0 : i32
    %c0_i32_0 = arith.constant 0 : i32
    %c0_i32_1 = arith.constant 0 : i32
    return %c0_i32, %c0_i32_0 : i32, i32
  }
  func.func @transform_1(%arg0: i32, %arg1: memref<16xi32, #tpu.memory_space<smem>>) -> (i32, i32) {
    %c0_i32 = arith.constant 0 : i32
    %c0_i32_0 = arith.constant 0 : i32
    return %arg0, %c0_i32 : i32, i32
  }
}

</mosaic_0001>

<bundles_post_ra>
// kernel: tpu_custom_call.1
= control target key start
LH: loop header
LB: loop body
LE: loop exit
PB: predicated region body
PF: predicated region fallthrough
CT: control target
= control target key end

     0   :  { %s410_s9 = smov [#allocation3]   ;;  %s555_s0 = inlined_call_operand.hbm [shape: s32[16], index: 0, kind: input, shape index: {}]   ;;  %s556_s1 = inlined_call_operand.hbm [shape: f32[64,128], index: 1, kind: input, shape index: {}]   ;;  %s557_s2 = inlined_call_operand.hbm [shape: f32[16,128], index: 2, kind: output, shape index: {}]  }
   0x1   :  { %8 = dma.hbm_to_smem %s555_s0, 16, %s410_s9, [#allocation2] }
   0x2   :  { %384 = dma.done.wait [#allocation2], 16 }
   0x3   :  { %385 = vsyncadd [#allocation2], 4294967280 }
   0x4   :  { %10 = sfence }
   0x5   :  { %11 = vsyncpa [#allocation5], 0 }
   0x6   :  { %12 = vsyncpa [#allocation6], 0 }
   0x7   :  { %14 = vsyncpa [#allocation6 + $0x1], 0  ;;  %s433_s12 = smov 0   ;;  %s435_s13 = smov 0  }
   0x8   :  { %s437_s14 = smov 0   ;;  %s439_s15 = smov 0  }
   0x9 LB: > { %s454_s0 = sadd.s32 4294967295, %s408_s15   ;;  %s244_s16 = sadd.s32 4294967294, %s408_s15   ;;  %s408_s15 = sphi %s439_s15, %s565_s15   ;;  %s404_s14 = sphi %s437_s14, %s564_s14   ;;  %s400_s13 = sphi %s435_s13, %s563_s13   ;;  %s396_s12 = sphi %s433_s12, %s562_s12  }
   0xa   : > { %s458_s17 = sadd.s32 1, %s408_s15   ;;  %s48_s18 = sadd.s32 1, %s404_s14 }
   0xb   : > { %s45_s19 = ssub.s32 %s408_s15, %s458_s17  ;;  %p58_p0 = scmp.ne.s32.totalorder %s404_s14, %s400_s13 }
   0xc   : > { %p46_p1 = scmp.eq.s32.totalorder %s45_s19, 0  ;;  %p59_p2 = scmp.eq.s32.totalorder %s454_s0, 1 }
   0xd   : > { %p64_p3 = scmp.ne.s32.totalorder %s400_s13, %s396_s12  ;;  %p65_p4 = scmp.eq.s32.totalorder %s244_s16, 1 }
   0xe   : > { %s469_s20 = scalar_select %p46_p1, %s404_s14, %s48_s18  }
   0xf   : > { %p471_p5 = por %p59_p2, %p58_p0  ;;  %p475_p6 = por %p65_p4, %p64_p3 }
  0x10   : > { %p245_p7 = scmp.ge.s32.totalorder %s408_s15, 1  ;;  %p72_p8 = scmp.lt.s32.totalorder %s408_s15, 3 }
  0x11   : > { %s559_s22 = scalar_select %p475_p6, 1, 0 }
  0x12   : > { %p269_p9 = scmp.eq.s32.totalorder %s454_s0, 0  ;;  %p482_p10 = pnand %p245_p7, %p72_p8 }
  0x13   : > { %s411_s24 = smov [#allocation4]  }
  0x14   : > { %s84_s25 = sshll.u32 %s411_s24, 4  ;;  %p261_p11 = pneg %p482_p10  ;;  %s85_s25 = int_to_ptr.vmem [resolvable:$true] %s84_s25 }
  0x15   : > { %s327_s26 = scalar_lea.vmem %s85_s25, 1024  ;;  %p335_p3 = scmp.lt.s32.totalorder %s85_s25, %s85_s25 }
  0x16   : > { %p262_p12 = pnand %p269_p9, %p261_p11  ;;  %p328_p0 = scmp.ne.s32.totalorder %s85_s25, %s327_s26 }
  0x17   : > { %p336_p4 = scmp.lt.s32.totalorder %s327_s26, %s327_s26 }
  0x18   : > { %p318_p13 = pneg %p262_p12 }
  0x19   : > { %p337_p6 = por %p336_p4, %p335_p3 }
  0x1a   : > { %p330_p1 = pnand %p328_p0, %p318_p13 }
  0x1c   : > { %p331_p2 = pneg %p330_p1 }
  0x1e   : > { %p338_p7 = pnand %p337_p6, %p331_p2 }
  0x20   : > { %341 = shalt.err (!%p338_p7)
}
  0x21   : > { %s412_s27 = smov 128   ;;  %s413_s28 = smov 8  }
  0x22   : > { %264 = dma.hbm_to_vmem [thread:$0]  (!%p262_p12), %s556_s1, 1024, %s85_s25, [#allocation5], %s412_s27, %s412_s27, %s413_s28  }
  0x23   : > { %100 = sbr.rel (%p482_p10) target bundleno = 81 (0x51), region = 24 }
  0x28   : > { %387 = dma.done.wait (%p269_p9), [#allocation5], 1024  }
  0x29   : > { %389 = vsyncadd (%p269_p9), [#allocation5], 4294966272  ;;  %s112_s3 = sand.u32 1, %s400_s13   ;;  %s250_s4 = sshll.u32 %s454_s0, 3 }
  0x2a   : > { %s249_s5 = sshll.u32 %s112_s3, 3  ;;  %s116_s6 = sld [smem:[#allocation3 + %s250_s4]] }
  0x2b   : > { %s121_s7 = sadd.s32 1, %s250_s4  ;;  %s127_s8 = sadd.s32 2, %s250_s4 }
  0x2c   : > { %s122_s9 = sld [smem:[#allocation3 + %s121_s7]]  ;;  %s133_s10 = sadd.s32 3, %s250_s4 }
  0x2d   : > { %s128_s11 = sld [smem:[#allocation3 + %s127_s8]]  ;;  %s139_s16 = sadd.s32 4, %s250_s4 }
  0x2e   : > { %s134_s18 = sld [smem:[#allocation3 + %s133_s10]]  ;;  %s145_s19 = sadd.s32 5, %s250_s4 }
  0x2f   : > { %s140_s23 = sld [smem:[#allocation3 + %s139_s16]]  ;;  %s151_s26 = sadd.s32 6, %s250_s4 }
  0x30   : > { %s117_s24 = scalar_lea.vmem [#allocation4], %s116_s6  ;;  %s146_s25 = sld [smem:[#allocation3 + %s145_s19]] }
  0x31   : > { %v118_v0 = vld [vmem:[%s117_s24] sm:$0x1]  ;;  %s152_s27 = sld [smem:[#allocation3 + %s151_s26]]  ;;  %s157_s28 = sadd.s32 7, %s250_s4 }
  0x32   : > { %v119_v1 = vmul.f32 11.313708, %v118_v0  ;;  %s158_s29 = sld [smem:[#allocation3 + %s157_s28]]  ;;  %s503_s30 = scalar_lea.vmem [#allocation7], %s249_s5 }
  0x33   : > { %s123_s7 = scalar_lea.vmem [#allocation4], %s122_s9  ;;  %s129_s6 = scalar_lea.vmem [#allocation4], %s128_s11 }
  0x34   : > { %120 = vst [vmem:[%s503_s30] sm:$0x1] %v119_v1  ;;  %v124_v2 = vld [vmem:[%s123_s7] sm:$0x1]  ;;  %s135_s8 = scalar_lea.vmem [#allocation4], %s134_s18  ;;  %s252_s5 = sshll.u32 %s454_s0, 7 }
  0x35   : > { %v125_v3 = vmul.f32 11.313708, %v124_v2  ;;  %v130_v4 = vld [vmem:[%s129_s6] sm:$0x1]  ;;  %s141_s4 = scalar_lea.vmem [#allocation4], %s140_s23  ;;  %s177_s10 = sshll.u32 %s503_s30, 4  ;;  %s178_s10 = int_to_ptr.vmem [resolvable:$true] %s177_s10 }
  0x36   : > { %v131_v5 = vmul.f32 11.313708, %v130_v4  ;;  %v136_v6 = vld [vmem:[%s135_s8] sm:$0x1]  ;;  %s147_s9 = scalar_lea.vmem [#allocation4], %s146_s25  ;;  %s516_s19 = scalar_lea.hbm %s557_s2, %s252_s5 }
  0x37   : > { %126 = vst [vmem:[%s503_s30 + $0x1] sm:$0x1] %v125_v3  ;;  %v137_v7 = vmul.f32 11.313708, %v136_v6  ;;  %v142_v8 = vld [vmem:[%s141_s4] sm:$0x1] }
  0x38   : > { %132 = vst [vmem:[%s503_s30 + $0x2] sm:$0x1] %v131_v5  ;;  %v143_v9 = vmul.f32 11.313708, %v142_v8  ;;  %v148_v10 = vld [vmem:[%s147_s9] sm:$0x1] }
  0x39   : > { %138 = vst [vmem:[%s503_s30 + $0x3] sm:$0x1] %v137_v7  ;;  %v149_v11 = vmul.f32 11.313708, %v148_v10  ;;  %s153_s11 = scalar_lea.vmem [#allocation4], %s152_s27  ;;  %s159_s16 = scalar_lea.vmem [#allocation4], %s158_s29 }
  0x3a   : > { %v154_v12 = vld [vmem:[%s153_s11] sm:$0x1]  ;;  %144 = vst [vmem:[%s503_s30 + $0x4] sm:$0x1] %v143_v9  ;;  %s164_s23 = scalar_lea.sflag [#allocation6], %s112_s3  ;;  %s342_s24 = scalar_lea.vmem %s178_s10, 128 }
  0x3b   : > { %v155_v13 = vmul.f32 11.313708, %v154_v12  ;;  %v160_v14 = vld [vmem:[%s159_s16] sm:$0x1]  ;;  %150 = vst [vmem:[%s503_s30 + $0x5] sm:$0x1] %v149_v11  ;;  %p343_p6 = scmp.ne.s32.totalorder %s178_s10, %s342_s24 }
  0x3c   : > { %v161_v15 = vmul.f32 11.313708, %v160_v14  ;;  %s414_s25 = smov [#allocation7]  }
  0x3d   : > { %156 = vst [vmem:[%s503_s30 + $0x6] sm:$0x1] %v155_v13  ;;  %p344_p8 = pnand %p343_p6, %p471_p5  ;;  %s346_s26 = sshll.u32 %s414_s25, 4  ;;  %s347_s26 = int_to_ptr.vmem [resolvable:$false] %s346_s26 }
  0x3e   : > { %162 = vst [vmem:[%s503_s30 + $0x7] sm:$0x1] %v161_v15  ;;  %s348_s27 = scalar_lea.vmem %s347_s26, 256  ;;  %p349_p10 = scmp.lt.s32.totalorder %s178_s10, %s347_s26 }
  0x3f   : > { %p345_p9 = pneg %p344_p8  ;;  %p350_p11 = scmp.lt.s32.totalorder %s348_s27, %s342_s24 }
  0x41   : > { %p351_p12 = por %p350_p11, %p349_p10 }
  0x43   : > { %p352_p13 = pnand %p351_p12, %p345_p9 }
  0x45   : > { %355 = shalt.err (!%p352_p13)
}
  0x46   : > { %s356_s28 = scalar_lea.hbm %s516_s19, 128  ;;  %s360_s30 = scalar_lea.hbm %s557_s2, 256 }
  0x47   : > { %p357_p0 = scmp.ne.s32.totalorder %s516_s19, %s356_s28  ;;  %p361_p3 = scmp.lt.s32.totalorder %s516_s19, %s557_s2 }
  0x48   : > { %p362_p4 = scmp.lt.s32.totalorder %s360_s30, %s356_s28 }
  0x49   : > { %p358_p1 = pnand %p357_p0, %p471_p5 }
  0x4a   : > { %p363_p7 = por %p362_p4, %p361_p3 }
  0x4b   : > { %p359_p2 = pneg %p358_p1 }
  0x4d   : > { %p364_p6 = pnand %p363_p7, %p359_p2 }
  0x4f   : > { %367 = shalt.err (!%p364_p6)
}
  0x50   : > { %259 = dma.vmem_to_hbm [thread:$0]  (%p471_p5), %s178_s10, 128, %s516_s19, %s164_s23  }
  0x51 PF: > { %p271_p8 = scmp.ge.s32.totalorder %s408_s15, 2  ;;  %s189_s8 = sand.u32 1, %s396_s12  }
  0x52   : > { %p561_p9 = scmp.ne.s32.totalorder %s559_s22, 0  ;;  %s190_s4 = scalar_lea.sflag [#allocation6], %s189_s8 }
  0x54   : > { %p266_p10 = pnand %p271_p8, %p561_p9 }
  0x56   : > { %p267_p11 = pneg %p266_p10 }
  0x58   : > { %391 = dma.done.wait (%p267_p11), %s190_s4, 128  }
  0x59   : > { %393 = vsyncadd (%p267_p11), %s190_s4, 4294967168  ;;  %p17_p12 = scmp.ge.s32.totalorder %s458_s17, 4   ;;  %s562_s12 = smov %s400_s13 }
  0x5a   : > { %s563_s13 = smov %s404_s14  ;;  %s564_s14 = smov %s469_s20 }
  0x5b   : > { %s565_s15 = smov %s458_s17  ;;  %19 = sbr.rel (!%p17_p12) target bundleno = 9 (0x9), region = 69 }
  0x60   :  { %195 = vsyncpa [#allocation5], 1 }
  0x61   :  { %197 = vsyncpa [#allocation5 + $0x1], 1 }
  0x62   :  { %198 = vsyncpa [#allocation6], 1 }
  0x63   :  { %200 = vsyncpa [#allocation6 + $0x1], 1 }

</bundles_post_ra>
